<compile_context>
chip_gen: v6e
topology: v6e:2x2x1
jax: 0.10.0
libtpu: 0.0.40
codegen_flags: <defaults>
</compile_context>

<pallas_src>
import functools

import jax
import jax.numpy as jnp
from jax.experimental import pallas as pl
from jax.experimental.pallas import tpu as pltpu


def _round_up(v: int, m: int) -> int:
    return (v + m - 1) // m * m


def _make_kernel(kt: int, n_pad: int, c_pad: int, act: str):
    """Fused temporal-conv + folded-align + activation kernel (one output tile)."""

    def kernel(x_ref, w_ref, b_ref, o_ref):
        # x_ref : (C_in, T_pad*N_pad)          bf16, full per-batch block
        # w_ref : (kt, rows, C_in)             bf16, align folded into tap kt-1
        # b_ref : (rows, 1)                    f32
        # o_ref : (c_pad, t_tile*N_pad)        f32
        tile = o_ref.shape[-1]
        j = pl.program_id(1)
        base = j * tile                       # multiple of 128 by construction

        # Bias-initialized accumulator: tap 0 matmul + broadcast bias (no zeros
        # materialization, no trailing full-width bias add).
        start0 = pl.multiple_of(base, 128)
        acc = jnp.dot(w_ref[0], x_ref[:, pl.ds(start0, tile)],
                      preferred_element_type=jnp.float32) + b_ref[...]
        for k in range(1, kt):
            start = pl.multiple_of(base + k * n_pad, 128)
            acc = acc + jnp.dot(w_ref[k], x_ref[:, pl.ds(start, tile)],
                                preferred_element_type=jnp.float32)

        # Row groups (each c_pad rows, sublane-aligned):
        #   GLU      : [value | gate | align]
        #   otherwise: [conv  | align]
        if act == "GLU":
            out = (acc[:c_pad] + acc[2 * c_pad:]) * jax.nn.sigmoid(
                acc[c_pad:2 * c_pad])
        elif act == "sigmoid":
            out = jax.nn.sigmoid(acc[:c_pad] + acc[c_pad:])
        else:  # relu
            out = jnp.maximum(acc[:c_pad] + acc[c_pad:], 0.0)

        o_ref[...] = out.astype(o_ref.dtype)

    return kernel


def temporal_conv_layer_pallas(x, w_conv, b_conv, w_align, b_align,
                               kt: int, c_out: int, act: str = "relu"):
    """x: (B, C_in, T, N) f32.  Returns (B, C_out, T-kt+1, N) f32."""
    B, c_in, T, N = x.shape
    t_out = T - kt + 1
    c_out_conv = w_conv.shape[0]
    assert c_out_conv == (2 * c_out if act == "GLU" else c_out)

    # --- padded geometry -------------------------------------------------
    c_pad = _round_up(c_out, 8)               # sublane-aligned row groups
    n_groups = 3 if act == "GLU" else 2
    rows = n_groups * c_pad

    n_pad = _round_up(N, 128)                 # lane-aligned node axis
    # Lane tile of >= 512 columns (measured ~85% of HBM roofline at 512).
    t_tile = min(t_out, max(1, -(-512 // n_pad)))
    n_tiles = -(-t_out // t_tile)
    t_out_pad = n_tiles * t_tile
    t_pad = t_out_pad + kt - 1
    tile = t_tile * n_pad

    # --- pack weights: conv taps + align folded into tap kt-1 ------------
    w_taps = jnp.transpose(w_conv[:, :, :, 0], (2, 0, 1))    # (kt, c_out_conv, c_in)
    wc = jnp.zeros((kt, rows, c_in), jnp.float32)
    wc = wc.at[:, 0:c_out, :].set(w_taps[:, :c_out, :])
    if act == "GLU":
        wc = wc.at[:, c_pad:c_pad + c_out, :].set(w_taps[:, c_out:, :])
    a0 = (n_groups - 1) * c_pad
    wc = wc.at[kt - 1, a0:a0 + c_out, :].set(w_align.astype(jnp.float32))

    bc = jnp.zeros((rows, 1), jnp.float32)
    bc = bc.at[0:c_out, 0].set(b_conv[:c_out])
    if act == "GLU":
        bc = bc.at[c_pad:c_pad + c_out, 0].set(b_conv[c_out:])
    bc = bc.at[a0:a0 + c_out, 0].set(b_align)

    # --- bf16 activations / weights, f32 accumulation --------------------
    x_p = jnp.pad(x, ((0, 0), (0, 0), (0, t_pad - T), (0, n_pad - N)))
    x_flat = x_p.reshape(B, c_in, t_pad * n_pad).astype(jnp.bfloat16)
    wc = wc.astype(jnp.bfloat16)

    kernel = _make_kernel(kt, n_pad, c_pad, act)

    # --- explicit VMEM budget (v7x: 64 MiB phys; v5e: 16 MiB scoped default)
    est = (2 * c_in * t_pad * n_pad * 2            # double-buffered bf16 input
           + 2 * kt * rows * c_in * 2 + 2 * rows * 4
           + 2 * c_pad * tile * 4                  # double-buffered f32 output
           + rows * tile * 4)                      # f32 accumulator
    vmem_limit = int(min(48 * 2**20, max(2 * est, 16 * 2**20)))

    out_flat = pl.pallas_call(
        kernel,
        out_shape=jax.ShapeDtypeStruct((B, c_pad, t_out_pad * n_pad), jnp.float32),
        grid_spec=pltpu.PrefetchScalarGridSpec(
            num_scalar_prefetch=0,
            grid=(B, n_tiles),
            in_specs=[
                # Full per-batch block, revisited across j (fetched once per b).
                pl.BlockSpec((None, c_in, t_pad * n_pad), lambda b, j: (b, 0, 0)),
                pl.BlockSpec((kt, rows, c_in), lambda b, j: (0, 0, 0)),
                pl.BlockSpec((rows, 1), lambda b, j: (0, 0)),
            ],
            out_specs=pl.BlockSpec((None, c_pad, tile), lambda b, j: (b, 0, j)),
        ),
        compiler_params=pltpu.CompilerParams(
            dimension_semantics=("parallel", "parallel"),
            vmem_limit_bytes=vmem_limit,
        ),
    )(x_flat, wc, bc)

    out = out_flat.reshape(B, c_pad, t_out_pad, n_pad)
    return out[:, :c_out, :t_out, :N]


def temporal_conv_layer_ref(x, w_conv, b_conv, w_align, b_align,
                            kt: int, c_out: int, act: str = "relu"):
    """Pure-JAX reference matching the PyTorch forward."""
    B, c_in, T, N = x.shape
    t_out = T - kt + 1
    w = w_conv[:, :, :, 0]                                   # (o, ci, kt)
    x_win = jnp.stack([x[:, :, k:k + t_out, :] for k in range(kt)], axis=0)
    x_conv = jnp.einsum("oik,kbitn->botn", w, x_win) + b_conv[None, :, None, None]
    x_in = (jnp.einsum("oi,bitn->botn", w_align, x[:, :, kt - 1:, :])
            + b_align[None, :, None, None])
    if act == "GLU":
        return (x_conv[:, :c_out] + x_in) * jax.nn.sigmoid(x_conv[:, c_out:])
    if act == "sigmoid":
        return jax.nn.sigmoid(x_conv + x_in)
    return jnp.maximum(x_conv + x_in, 0.0)


def make_align_params(key, c_in: int, c_out: int):
    """Replicates `align`: 1x1 conv (c_in>c_out), zero-pad or identity otherwise."""
    if c_in > c_out:
        kw, kb = jax.random.split(key)
        bound = 1.0 / (c_in ** 0.5)
        w = jax.random.uniform(kw, (c_out, c_in), jnp.float32, -bound, bound)
        b = jax.random.uniform(kb, (c_out,), jnp.float32, -bound, bound)
        return w, b
    return jnp.eye(c_out, c_in, dtype=jnp.float32), jnp.zeros((c_out,), jnp.float32)


if __name__ == "__main__":
    def make_case(key, B, c_in, T, N, kt, c_out, act):
        c_out_conv = 2 * c_out if act == "GLU" else c_out
        kx, kw, kb, ka = jax.random.split(key, 4)
        x = jax.random.normal(kx, (B, c_in, T, N), jnp.float32)
        bound = 1.0 / ((c_in * kt) ** 0.5)
        w_conv = jax.random.uniform(kw, (c_out_conv, c_in, kt, 1), jnp.float32,
                                    -bound, bound)
        b_conv = jax.random.uniform(kb, (c_out_conv,), jnp.float32, -bound, bound)
        w_align, b_align = make_align_params(ka, c_in, c_out)
        return x, w_conv, b_conv, w_align, b_align

    def bf16_round(a):
        return a.astype(jnp.bfloat16).astype(jnp.float32)

    cases = [
        # (B, c_in, T, N,   kt, c_out, act)
        (2, 4, 8, 128, 3, 8, "GLU"),     # GLU, channel-pad align path
        (2, 16, 8, 100, 3, 8, "relu"),   # relu, 1x1-conv align, N not mult of 128
    ]

    key = jax.random.PRNGKey(0)
    for (B, c_in, T, N, kt, c_out, act) in cases:
        key, sub = jax.random.split(key)
        x, w_conv, b_conv, w_align, b_align = make_case(sub, B, c_in, T, N,
                                                        kt, c_out, act)

        run = functools.partial(temporal_conv_layer_pallas,
                                kt=kt, c_out=c_out, act=act)
        out = jax.block_until_ready(run(x, w_conv, b_conv, w_align, b_align))

        # Kernel runs matmuls in bf16 with f32 accumulation, so compare against
        # the reference evaluated on bf16-rounded activations/weights.
        ref = temporal_conv_layer_ref(bf16_round(x), bf16_round(w_conv), b_conv,
                                      bf16_round(w_align), b_align,
                                      kt=kt, c_out=c_out, act=act)

        assert out.shape == (B, c_out, T - kt + 1, N), out.shape
        max_err = float(jnp.max(jnp.abs(out - ref)))
        assert jnp.allclose(out, ref, atol=2e-3, rtol=2e-3), max_err

    print("KERNEL_OK")
</pallas_src>

<mosaic_0001>
module attributes {stable_mosaic.version = 11 : i64} {
  func.func @kernel(%arg0: i32, %arg1: i32, %arg2: memref<1x4x1280xbf16, #tpu.memory_space<vmem>>, %arg3: memref<3x24x4xbf16, #tpu.memory_space<vmem>>, %arg4: memref<24x1xf32, #tpu.memory_space<vmem>>, %arg5: memref<1x8x512xf32, #tpu.memory_space<vmem>>) attributes {dimension_semantics = [#tpu.dimension_semantics<parallel>, #tpu.dimension_semantics<parallel>], iteration_bounds = array<i64: 2, 2>, scalar_prefetch = 0 : i64, scratch_operands = 0 : i64, tpu.core_type = #tpu.core_type<tc>, window_params = [{transform_indices = @transform_0, window_bounds = array<i64: 1, 4, 1280>}, {pipeline_mode = #tpu.pipeline_mode<synchronous>, transform_indices = @transform_1, window_bounds = array<i64: 3, 24, 4>}, {pipeline_mode = #tpu.pipeline_mode<synchronous>, transform_indices = @transform_2, window_bounds = array<i64: 24, 1>}, {transform_indices = @transform_3, window_bounds = array<i64: 1, 8, 512>}]} {
    %c512_i32 = arith.constant 512 : i32
    %0 = arith.muli %arg1, %c512_i32 : i32
    %1 = tpu.assume_multiple %0, 128 : i32
    %c0 = arith.constant 0 : index
    %c0_0 = arith.constant 0 : index
    %c0_1 = arith.constant 0 : index
    %2 = vector.load %arg3[%c0, %c0_0, %c0_1] : memref<3x24x4xbf16, #tpu.memory_space<vmem>>, vector<1x24x4xbf16>
    %3 = vector.shape_cast %2 : vector<1x24x4xbf16> to vector<24x4xbf16>
    %c0_2 = arith.constant 0 : index
    %c0_3 = arith.constant 0 : index
    %4 = arith.index_cast %1 : i32 to index
    %5 = vector.load %arg2[%c0_2, %c0_3, %4] : memref<1x4x1280xbf16, #tpu.memory_space<vmem>>, vector<1x4x512xbf16>
    %6 = vector.shape_cast %5 : vector<1x4x512xbf16> to vector<4x512xbf16>
    %cst = arith.constant dense<0.000000e+00> : vector<24x512xf32>
    %7 = tpu.matmul %3, %6, %cst {dimension_numbers = #tpu.dot_dimension_numbers<[1], [0], [0], [1], [0, 0, 1, 1], [], []>} : vector<24x4xbf16>, vector<4x512xbf16>, vector<24x512xf32> -> vector<24x512xf32>
    %c0_4 = arith.constant 0 : index
    %c0_5 = arith.constant 0 : index
    %8 = vector.load %arg4[%c0_4, %c0_5] : memref<24x1xf32, #tpu.memory_space<vmem>>, vector<24x1xf32>
    %9 = vector.broadcast %8 : vector<24x1xf32> to vector<24x512xf32>
    %10 = arith.addf %7, %9 : vector<24x512xf32>
    %c128_i32 = arith.constant 128 : i32
    %11 = arith.addi %0, %c128_i32 : i32
    %12 = tpu.assume_multiple %11, 128 : i32
    %c1 = arith.constant 1 : index
    %c0_6 = arith.constant 0 : index
    %c0_7 = arith.constant 0 : index
    %13 = vector.load %arg3[%c1, %c0_6, %c0_7] : memref<3x24x4xbf16, #tpu.memory_space<vmem>>, vector<1x24x4xbf16>
    %14 = vector.shape_cast %13 : vector<1x24x4xbf16> to vector<24x4xbf16>
    %c0_8 = arith.constant 0 : index
    %c0_9 = arith.constant 0 : index
    %15 = arith.index_cast %12 : i32 to index
    %16 = vector.load %arg2[%c0_8, %c0_9, %15] : memref<1x4x1280xbf16, #tpu.memory_space<vmem>>, vector<1x4x512xbf16>
    %17 = vector.shape_cast %16 : vector<1x4x512xbf16> to vector<4x512xbf16>
    %cst_10 = arith.constant dense<0.000000e+00> : vector<24x512xf32>
    %18 = tpu.matmul %14, %17, %cst_10 {dimension_numbers = #tpu.dot_dimension_numbers<[1], [0], [0], [1], [0, 0, 1, 1], [], []>} : vector<24x4xbf16>, vector<4x512xbf16>, vector<24x512xf32> -> vector<24x512xf32>
    %19 = arith.addf %10, %18 : vector<24x512xf32>
    %c256_i32 = arith.constant 256 : i32
    %20 = arith.addi %0, %c256_i32 : i32
    %21 = tpu.assume_multiple %20, 128 : i32
    %c2 = arith.constant 2 : index
    %c0_11 = arith.constant 0 : index
    %c0_12 = arith.constant 0 : index
    %22 = vector.load %arg3[%c2, %c0_11, %c0_12] : memref<3x24x4xbf16, #tpu.memory_space<vmem>>, vector<1x24x4xbf16>
    %23 = vector.shape_cast %22 : vector<1x24x4xbf16> to vector<24x4xbf16>
    %c0_13 = arith.constant 0 : index
    %c0_14 = arith.constant 0 : index
    %24 = arith.index_cast %21 : i32 to index
    %25 = vector.load %arg2[%c0_13, %c0_14, %24] : memref<1x4x1280xbf16, #tpu.memory_space<vmem>>, vector<1x4x512xbf16>
    %26 = vector.shape_cast %25 : vector<1x4x512xbf16> to vector<4x512xbf16>
    %cst_15 = arith.constant dense<0.000000e+00> : vector<24x512xf32>
    %27 = tpu.matmul %23, %26, %cst_15 {dimension_numbers = #tpu.dot_dimension_numbers<[1], [0], [0], [1], [0, 0, 1, 1], [], []>} : vector<24x4xbf16>, vector<4x512xbf16>, vector<24x512xf32> -> vector<24x512xf32>
    %28 = arith.addf %19, %27 : vector<24x512xf32>
    %29 = vector.extract_strided_slice %28 {offsets = [0, 0], sizes = [8, 512], strides = [1, 1]} : vector<24x512xf32> to vector<8x512xf32>
    %30 = vector.extract_strided_slice %28 {offsets = [16, 0], sizes = [8, 512], strides = [1, 1]} : vector<24x512xf32> to vector<8x512xf32>
    %31 = arith.addf %29, %30 : vector<8x512xf32>
    %32 = vector.extract_strided_slice %28 {offsets = [8, 0], sizes = [8, 512], strides = [1, 1]} : vector<24x512xf32> to vector<8x512xf32>
    %33 = arith.negf %32 : vector<8x512xf32>
    %34 = math.exp %33 : vector<8x512xf32>
    %cst_16 = arith.constant 1.000000e+00 : f32
    %35 = vector.broadcast %cst_16 : f32 to vector<8x512xf32>
    %36 = arith.addf %35, %34 : vector<8x512xf32>
    %37 = arith.divf %35, %36 : vector<8x512xf32>
    %38 = arith.mulf %31, %37 : vector<8x512xf32>
    %c0_17 = arith.constant 0 : index
    %c0_18 = arith.constant 0 : index
    %c0_19 = arith.constant 0 : index
    %39 = vector.load %arg5[%c0_17, %c0_18, %c0_19] : memref<1x8x512xf32, #tpu.memory_space<vmem>>, vector<1x8x512xf32>
    %40 = vector.shape_cast %39 : vector<1x8x512xf32> to vector<8x512xf32>
    %41 = vector.shape_cast %38 : vector<8x512xf32> to vector<1x8x512xf32>
    tpu.vector_store %arg5[%c0_17, %c0_18, %c0_19], %41 {strides = array<i32>} : memref<1x8x512xf32, #tpu.memory_space<vmem>>, vector<1x8x512xf32>,
    return
  }
  func.func @transform_0(%arg0: i32, %arg1: i32) -> (i32, i32, i32) {
    %c0_i32 = arith.constant 0 : i32
    %c0_i32_0 = arith.constant 0 : i32
    %c0_i32_1 = arith.constant 0 : i32
    return %arg0, %c0_i32, %c0_i32_0 : i32, i32, i32
  }
  func.func @transform_1(%arg0: i32, %arg1: i32) -> (i32, i32, i32) {
    %c0_i32 = arith.constant 0 : i32
    %c0_i32_0 = arith.constant 0 : i32
    %c0_i32_1 = arith.constant 0 : i32
    %c0_i32_2 = arith.constant 0 : i32
    return %c0_i32, %c0_i32_0, %c0_i32_1 : i32, i32, i32
  }
  func.func @transform_2(%arg0: i32, %arg1: i32) -> (i32, i32) {
    %c0_i32 = arith.constant 0 : i32
    %c0_i32_0 = arith.constant 0 : i32
    %c0_i32_1 = arith.constant 0 : i32
    return %c0_i32, %c0_i32_0 : i32, i32
  }
  func.func @transform_3(%arg0: i32, %arg1: i32) -> (i32, i32, i32) {
    %c0_i32 = arith.constant 0 : i32
    %c0_i32_0 = arith.constant 0 : i32
    return %arg0, %c0_i32, %arg1 : i32, i32, i32
  }
}

</mosaic_0001>

<bundles_post_ra>
// kernel: tpu_custom_call.1
= control target key start
LH: loop header
LB: loop body
LE: loop exit
PB: predicated region body
PF: predicated region fallthrough
CT: control target
= control target key end

     0   :  { %8 = vsyncpa [#allocation3], 0  ;;  %s1346_s0 = inlined_call_operand.vmem [shape: bf16[2,4,1280], index: 0, kind: input, shape index: {}]   ;;  %s1347_s1 = inlined_call_operand.vmem [shape: bf16[3,24,4], index: 1, kind: input, shape index: {}]   ;;  %s1348_s2 = inlined_call_operand.vmem [shape: f32[24,1], index: 2, kind: input, shape index: {}]   ;;  %s1349_s3 = inlined_call_operand.hbm [shape: f32[2,8,1024], index: 3, kind: output, shape index: {}]  }
   0x1   :  { %10 = vsyncpa [#allocation3 + $0x1], 0  ;;  %s1097_s12 = smov 0   ;;  %s1099_s13 = smov 0  }
   0x2   :  { %s1101_s14 = smov 0   ;;  %s1103_s15 = smov 0  }
   0x3   :  { %s1105_s16 = smov 0   ;;  %s1107_s17 = smov 0  }
   0x4   :  { %s1109_s18 = smov 0   ;;  %s1111_s19 = smov 0  }
   0x5 LB: > { %1354 = sst [smem:[#allocation5_spill]] %s1064_s17  ;;  %s828_s20 = sadd.s32 4294967295, %s1072_s19   ;;  %s1072_s19 = sphi %s1111_s19, %s16_s19   ;;  %s1068_s18 = sphi %s1109_s18, %s1363_s18   ;;  %s1064_s17 = sphi %s1107_s17, %s1362_s17   ;;  %s1060_s16 = sphi %s1105_s16, %s1361_s16   ;;  %s1056_s15 = sphi %s1103_s15, %s1360_s15   ;;  %s1052_s14 = sphi %s1101_s14, %s1366_s14   ;;  %s1048_s13 = sphi %s1099_s13, %s1365_s13   ;;  %s1044_s12 = sphi %s1097_s12, %s1364_s12  }
   0x6   : > { %1355 = sst [smem:[#allocation6_spill]] %s1068_s18  ;;  %s829_s21 = sadd.s32 4294967294, %s1072_s19  }
   0x7   : > { %s25_s22 = sadd.s32 1, %s1064_s17  ;;  %s28_s23 = sadd.s32 1, %s1068_s18 }
   0x8   : > { %p26_p0 = scmp.ge.s32.totalorder %s25_s22, 2  ;;  %p115_p1 = scmp.ne.s32.totalorder %s1052_s14, %s1048_s13 }
   0x9   : > { %p116_p2 = scmp.eq.s32.totalorder %s828_s20, 3  ;;  %p121_p5 = scmp.ne.s32.totalorder %s1048_s13, %s1044_s12 }
   0xa   : > { %s1368_s22 = smov (%p26_p0, %s25_s22), 0  ;;  %s1370_s23 = smov (!%p26_p0, %s28_s23), %s1068_s18 }
   0xb   : > { %1356 = sst [smem:[#allocation7_spill]] %s1368_s22  ;;  %s101_s24 = ssub.s32 %s1064_s17, %s1368_s22 }
   0xc   : > { %p1148_p3 = por %p116_p2, %p115_p1  ;;  %p30_p4 = scmp.ge.s32.totalorder %s1370_s23, 2 }
   0xd   : > { %p122_p6 = scmp.eq.s32.totalorder %s829_s21, 3  ;;  %p832_p7 = scmp.ge.s32.totalorder %s1072_s19, 1 }
   0xe   : > { %s1372_s23 = smov (%p30_p4, %s1370_s23), 0  ;;  %p154_p9 = scmp.lt.s32.totalorder %s1072_s19, 5 }
   0xf   : > { %1358 = sst [smem:[#allocation8_spill]] %s1372_s23  ;;  %p1157_p8 = por %p122_p6, %p121_p5 }
  0x10   : > { %s100_s27 = ssub.s32 %s1068_s18, %s1372_s23  ;;  %s105_s28 = sadd.s32 1, %s1052_s14 }
  0x11   : > { %s102_s29 = sor.u32 %s101_s24, %s100_s27  ;;  %p155_p10 = pnand %p832_p7, %p154_p9 }
  0x12   : > { %p103_p11 = scmp.eq.s32.totalorder %s102_s29, 0  ;;  %p178_p12 = scmp.lt.s32.totalorder (!%p155_p10), %s1060_s16, 1 }
  0x13   : > { %158 = sbr.rel (%p155_p10) target bundleno = 321 (0x141), region = 32  ;;  %s835_s4 = sshll.u32 (!%p155_p10), %s1056_s15, 9 }
  0x14   : > { %s1166_s30 = scalar_select %p103_p11, %s1052_s14, %s105_s28  }
  0x15   : > { %s189_s5 = sshra.s32 (!%p155_p10), %s835_s4, 7  ;;  %s360_s6 = sadd.s32 (!%p155_p10), 128, %s835_s4 }
  0x16   : > { %s836_s8 = sshll.u32 (!%p155_p10), %s189_s5, 1  ;;  %s365_s9 = sshra.s32 (!%p155_p10), %s360_s6, 7 }
  0x17   : > { %s848_s11 = sshll.u32 (!%p155_p10), %s365_s9, 1  ;;  %s528_s20 = sadd.s32 (!%p155_p10), 256, %s835_s4 }
  0x18   : > { %v225_v0 = vlaneseq  ;;  %v1074_v1 = vmov 1983009808   ;;  %v1075_v3 = vmov 0   ;;  %s179_s7 = scalar_select %p178_p12, %s1060_s16, 1  ;;  %v195_v7 = vld [vmem:[%s1348_s2 + $0x8] sm:$0xff]  ;;  %v194_v8 = vld [vmem:[%s1348_s2] sm:$0xff] }
  0x19   : > { %v223_v2 = vunpack.c.l.s4 %v1074_v1  ;;  %290 = vmatprep.mubr.bf16.mxu0 %v1075_v3  ;;  %341 = vmatprep.mubr.bf16.mxu1 %v1075_v3  ;;  %s533_s23 = sshra.s32 %s528_s20, 7  ;;  %v196_v9 = vld [vmem:[%s1348_s2 + $0x10] sm:$0xff]  ;;  %vm245_vm0 = vcmask 1041408   ;;  %v958_v26 = vld [vmem:[%s1347_s1] sm:$0xff]   ;;  %vm238_vm1 = vcmask 31744   ;;  %v962_v38 = vld [vmem:[%s1347_s1 + $0x18] sm:$0xff]  }
  0x1a   : > { %v226_v4 = vshrl.u32 %v225_v0, 7  ;;  %953 = vset.pattern.permute.xlu0 %v1075_v3  ;;  %954 = vset.pattern.permute.xlu1 %v1075_v3  ;;  %s879_s10 = smul.u32 20, %s179_s7  ;;  %s860_s4 = sshll.u32 %s533_s23, 1  ;;  %v959_v33 = vld [vmem:[%s1347_s1 + $0x8] ss:$0 sps:$4 sm:$0xff]   ;;  %v960_v34 = vld [vmem:[%s1347_s1 + $0xc] sm:$0xff]  }
  0x1b   : > { %v224_v5 = vunpack.c.0.s8 %v223_v2  ;;  %204 = vperm.xlu0 %953, %v195_v7   ;;  %209 = vperm.xlu1 %954, %v196_v9   ;;  %v961_v37 = vld [vmem:[%s1347_s1 + $0x14] ss:$0 sps:$4 sm:$0xff]   ;;  %v963_v39 = vld [vmem:[%s1347_s1 + $0x20] ss:$0 sps:$4 sm:$0xff]   ;;  %s874_s6 = sshll.u32 %s1056_s15, 2  ;;  %s875_s7 = sshll.u32 %s1060_s16, 3 }
  0x1c   : > { %s182_s29 = scalar_lea.vmem %s1346_s0, %s879_s10  ;;  %s1076_s10 = smov [#allocation2]  }
  0x1d   : > { %v227_v6 = vsub.s32 %v224_v5, %v226_v4  ;;  %s192_s22 = scalar_lea.vmem %s182_s29, %s836_s8  ;;  %s368_s18 = scalar_lea.vmem %s182_s29, %s848_s11 }
  0x1e   : > { %v193_v10 = vld [vmem:[%s192_s22] sm:$0xff]  ;;  %s536_s9 = scalar_lea.vmem %s182_s29, %s860_s4  ;;  %s175_s29 = sand.u32 1, %s1048_s13  }
  0x1f   : > { %v369_v11 = vld [vmem:[%s368_s18] sm:$0xff]  ;;  %v228_v12 = vrot.slane %v193_v10, %v227_v6  ;;  %v221_v14 = vcombine.high %v193_v10, %v193_v10  ;;  %199 = vperm.xlu0 %953, %v194_v8   ;;  %s833_s5 = sshll.u32 %s175_s29, 5  ;;  %s745_s4 = sadd.s32 %s875_s7, %s874_s6 }
  0x20   : > { %v379_v13 = vcombine.high %v369_v11, %v369_v11  ;;  %v386_v15 = vrot.slane %v369_v11, %v227_v6  ;;  %v537_v16 = vld [vmem:[%s536_s9] sm:$0xff]  ;;  %s177_s15 = scalar_lea.vmem [#allocation2], %s833_s5  ;;  %s876_s16 = sshll.u32 %s745_s4, 7 }
  0x21   : > { %v236_v17 = vcombine.high %v228_v12, %v228_v12  ;;  %v547_v18 = vcombine.high %v537_v16, %v537_v16  ;;  %v247_v19 = vsel %vm245_vm0, %v228_v12, 0  ;;  %v235_v20 = vrot.slane %v221_v14, %v227_v6  ;;  %s749_s9 = sshll.u32 %s177_s15, 4  ;;  %s747_s22 = scalar_lea.hbm %s1349_s3, %s876_s16  ;;  %s750_s9 = int_to_ptr.vmem [resolvable:$true] %s749_s9 }
  0x22   : > { %v394_v21 = vcombine.high %v386_v15, %v386_v15  ;;  %v393_v22 = vrot.slane %v379_v13, %v227_v6  ;;  %v554_v23 = vrot.slane %v537_v16, %v227_v6  ;;  %v403_v29 = vsel %vm245_vm0, %v386_v15, 0  ;;  %s733_s23 = scalar_lea.sflag [#allocation3], %s175_s29  ;;  %s980_s8 = scalar_lea.vmem %s750_s9, 512 }
  0x23   : > { %839 = vmatprep.subr.msk.bf16.mxu0 %vm245_vm0, %v236_v17  ;;  %v237_v24 = vcombine.high %v235_v20, %v235_v20  ;;  %v253_v25 = vsel %vm245_vm0, %v235_v20, 0  ;;  %v561_v27 = vrot.slane %v547_v18, %v227_v6  ;;  %p981_p13 = scmp.ne.s32.totalorder %s750_s9, %s980_s8  ;;  %s984_s11 = sshll.u32 %s1076_s10, 4  ;;  %s985_s11 = int_to_ptr.vmem [resolvable:$false] %s984_s11 }
  0x24   : > { %273 = vmatpush1.bf16.msra.mxu0 %v247_v19  ;;  %v395_v28 = vcombine.high %v393_v22, %v393_v22  ;;  %v562_v30 = vcombine.high %v554_v23, %v554_v23  ;;  %v409_v31 = vsel %vm245_vm0, %v393_v22, 0  ;;  %v571_v35 = vsel %vm245_vm0, %v554_v23, 0  ;;  %s986_s20 = scalar_lea.vmem %s985_s11, 1024  ;;  %p987_p2 = scmp.lt.s32.totalorder %s750_s9, %s985_s11 }
  0x25   : > { %842 = vmatprep.subr.msk.bf16.mxu1 %vm245_vm0, %v237_v24  ;;  %851 = vmatprep.subr.msk.bf16.mxu0 %vm245_vm0, %v394_v21  ;;  %v563_v32 = vcombine.high %v561_v27, %v561_v27  ;;  %v577_v36 = vsel %vm245_vm0, %v561_v27, 0  ;;  %p982_p0 = pnand %p981_p13, %p1148_p3  ;;  %p988_p4 = scmp.lt.s32.totalorder %s986_s20, %s980_s8 }
  0x26   : > { %324 = vmatpush1.bf16.msra.mxu1 %v253_v25 }
  0x27   : > { %840 = vmatmul.mubr.msk.bf16.vlgmr.msra.gmra.mxu0 %vm238_vm1, %v958_v26  ;;  %854 = vmatprep.subr.msk.bf16.mxu1 %vm245_vm0, %v395_v28  ;;  %p983_p1 = pneg %p982_p0  ;;  %p989_p5 = por %p988_p4, %p987_p2 }
  0x28   : > { %429 = vmatpush1.bf16.msra.mxu0 %v403_v29  ;;  %300 = vmatprep.mubr.bf16.mxu0 %v1075_v3 }
  0x29   : > { %843 = vmatmul.mubr.msk.bf16.vlgmr.msra.gmra.mxu1 %vm238_vm1, %v958_v26  ;;  %863 = vmatprep.subr.msk.bf16.mxu0 %vm245_vm0, %v562_v30  ;;  %p990_p6 = pnand %p989_p5, %p983_p1 }
  0x2a   : > { %480 = vmatpush1.bf16.msra.mxu1 %v409_v31  ;;  %351 = vmatprep.mubr.bf16.mxu1 %v1075_v3 }
  0x2b   : > { %866 = vmatprep.subr.msk.bf16.mxu1 %vm245_vm0, %v563_v32 }
  0x2f   : > { %841 = vmatmul.mubr.msk.bf16.gmra.mxu0 %vm238_vm1, %v959_v33 }
  0x30   : > { %446 = vmatprep.mubr.bf16.mxu0 %v1075_v3 }
  0x31   : > { %844 = vmatmul.mubr.msk.bf16.gmra.mxu1 %vm238_vm1, %v959_v33 }
  0x32   : > { %497 = vmatprep.mubr.bf16.mxu1 %v1075_v3 }
  0x37   : > { %852 = vmatmul.mubr.msk.bf16.vlgmr.msra.gmra.mxu0 %vm238_vm1, %v960_v34 }
  0x38   : > { %597 = vmatpush1.bf16.msra.mxu0 %v571_v35  ;;  %456 = vmatprep.mubr.bf16.mxu0 %v1075_v3 }
  0x39   : > { %855 = vmatmul.mubr.msk.bf16.vlgmr.msra.gmra.mxu1 %vm238_vm1, %v960_v34 }
  0x3a   : > { %648 = vmatpush1.bf16.msra.mxu1 %v577_v36  ;;  %507 = vmatprep.mubr.bf16.mxu1 %v1075_v3 }
  0x3f   : > { %853 = vmatmul.mubr.msk.bf16.gmra.mxu0 %vm238_vm1, %v961_v37 }
  0x40   : > { %614 = vmatprep.mubr.bf16.mxu0 %v1075_v3 }
  0x41   : > { %856 = vmatmul.mubr.msk.bf16.gmra.mxu1 %vm238_vm1, %v961_v37 }
  0x42   : > { %665 = vmatprep.mubr.bf16.mxu1 %v1075_v3 }
  0x47   : > { %864 = vmatmul.mubr.msk.bf16.vlgmr.msra.gmra.mxu0 %vm238_vm1, %v962_v38 }
  0x48   : > { %624 = vmatprep.mubr.bf16.mxu0 %v1075_v3 }
  0x49   : > { %867 = vmatmul.mubr.msk.bf16.vlgmr.msra.gmra.mxu1 %vm238_vm1, %v962_v38 }
  0x4a   : > { %675 = vmatprep.mubr.bf16.mxu1 %v1075_v3 }
  0x4f   : > { %865 = vmatmul.mubr.msk.bf16.gmra.mxu0 %vm238_vm1, %v963_v39 }
  0x51   : > { %868 = vmatmul.mubr.msk.bf16.gmra.mxu1 %vm238_vm1, %v963_v39 }
  0x96   : > { %v205_v7 = vpop.permute.xlu0 %204 }
  0xe7   : > { %v1239_v40 = vpop.f32.mrf.mxu0 }
  0xe9   : > { %v1241_v41 = vpop.f32.mrf.mxu0  ;;  %v1243_v42 = vpop.f32.mrf.mxu1 }
  0xeb   : > { %v296_v43 = vpop.f32.mrf.mxu0  ;;  %v1245_v44 = vpop.f32.mrf.mxu1 }
  0xec   : > { %v297_v10 = vadd.f32 %v296_v43, %v205_v7 }
  0xed   : > { %v298_v45 = vpop.f32.mrf.mxu0  ;;  %v347_v46 = vpop.f32.mrf.mxu1 }
  0xee   : > { %v299_v13 = vadd.f32 %v298_v45, %v205_v7  ;;  %v348_v14 = vadd.f32 %v347_v46, %v205_v7 }
  0xef   : > { %v1247_v47 = vpop.f32.mrf.mxu0  ;;  %v349_v48 = vpop.f32.mrf.mxu1 }
  0xf0   : > { %v350_v21 = vadd.f32 %v349_v48, %v205_v7 }
  0xf1   : > { %v1249_v49 = vpop.f32.mrf.mxu0  ;;  %v1251_v50 = vpop.f32.mrf.mxu1 }
  0xf3   : > { %v306_v51 = vpop.f32.mrf.mxu0  ;;  %v1253_v52 = vpop.f32.mrf.mxu1 }
  0xf5   : > { %v307_v53 = vpop.f32.mrf.mxu0  ;;  %v357_v54 = vpop.f32.mrf.mxu1 }
  0xf6   : > { %v210_v54 = vpop.permute.xlu1 %209 }
  0xf7   : > { %v358_v55 = vpop.f32.mrf.mxu1  ;;  %v1255_v56 = vpop.f32.mrf.mxu0  ;;  %v354_v7 = vadd.f32 %v1251_v50, %v210_v54 }
  0xf9   : > { %v1257_v57 = vpop.f32.mrf.mxu0  ;;  %v1259_v58 = vpop.f32.mrf.mxu1 }
  0xfb   : > { %v452_v59 = vpop.f32.mrf.mxu0  ;;  %v1261_v60 = vpop.f32.mrf.mxu1 }
  0xfc   : > { %v520_v15 = vadd.f32 %v452_v59, %v297_v10 }
  0xfd   : > { %v454_v61 = vpop.f32.mrf.mxu0  ;;  %v503_v62 = vpop.f32.mrf.mxu1 }
  0xfe   : > { %v521_v18 = vadd.f32 %v454_v61, %v299_v13  ;;  %v522_v19 = vadd.f32 %v503_v62, %v348_v14  ;;  %v200_v61 = vpop.permute.xlu0 %199 }
  0xff   : > { %v458_v63 = vpop.f32.mrf.mxu0  ;;  %v505_v0 = vpop.f32.mrf.mxu1  ;;  %v295_v10 = vadd.f32 %v1241_v41, %v200_v61  ;;  %v346_v41 = vadd.f32 %v1245_v44, %v200_v61 }
 0x100   : > { %v523_v27 = vadd.f32 %v505_v0, %v350_v21  ;;  %v303_v0 = vadd.f32 %v1247_v47, %v210_v54  ;;  %v356_v47 = vadd.f32 %v1253_v52, %v210_v54 }
 0x101   : > { %v1263_v1 = vpop.f32.mrf.mxu0  ;;  %v1265_v2 = vpop.f32.mrf.mxu1 }
 0x103   : > { %v462_v3 = vpop.f32.mrf.mxu0  ;;  %v1267_v4 = vpop.f32.mrf.mxu1 }
 0x104   : > { %v293_v3 = vadd.f32 %v1239_v40, %v200_v61  ;;  %v526_v40 = vadd.f32 %v1265_v2, %v354_v7 }
 0x105   : > { %v463_v5 = vpop.f32.mrf.mxu0  ;;  %v513_v6 = vpop.f32.mrf.mxu1 }
 0x106   : > { %v524_v5 = vadd.f32 %v458_v63, %v303_v0  ;;  %v305_v6 = vadd.f32 %v1249_v49, %v210_v54  ;;  %v517_v49 = vadd.f32 %v1257_v57, %v295_v10 }
 0x107   : > { %v514_v8 = vpop.f32.mrf.mxu1  ;;  %v1269_v9 = vpop.f32.mrf.mxu0 }
 0x108   : > { %v516_v8 = vadd.f32 %v1255_v56, %v293_v3  ;;  %v525_v13 = vadd.f32 %v1263_v1, %v305_v6  ;;  %v527_v1 = vadd.f32 %v1267_v4, %v356_v47 }
 0x109   : > { %v1271_v11 = vpop.f32.mrf.mxu0  ;;  %v1273_v12 = vpop.f32.mrf.mxu1 }
 0x10a   : > { %v684_v63 = vadd.f32 %v1269_v9, %v516_v8 }
 0x10b   : > { %v620_v16 = vpop.f32.mrf.mxu0  ;;  %v1275_v17 = vpop.f32.mrf.mxu1 }
 0x10c   : > { %v688_v20 = vadd.f32 %v620_v16, %v520_v15  ;;  %v344_v15 = vadd.f32 %v1243_v42, %v200_v61  ;;  %v685_v42 = vadd.f32 %v1271_v11, %v517_v49 }
 0x10d   : > { %v622_v22 = vpop.f32.mrf.mxu0  ;;  %v671_v23 = vpop.f32.mrf.mxu1 }
 0x10e   : > { %v869_v24 = vmul.f32 -1.442695, %v688_v20  ;;  %v689_v25 = vadd.f32 %v622_v22, %v521_v18  ;;  %v690_v26 = vadd.f32 %v671_v23, %v522_v19  ;;  %v518_v56 = vadd.f32 %v1259_v58, %v344_v15 }
 0x10f   : > { %v626_v28 = vpop.f32.mrf.mxu0  ;;  %v673_v29 = vpop.f32.mrf.mxu1  ;;  %v519_v18 = vadd.f32 %v1261_v60, %v346_v41 }
 0x110   : > { %964 = vpow2.f32 %v869_v24  ;;  %v870_v30 = vmul.f32 -1.442695, %v689_v25  ;;  %v871_v31 = vmul.f32 -1.442695, %v690_v26  ;;  %v691_v32 = vadd.f32 %v673_v29, %v523_v27 }
 0x111   : > { %v628_v33 = vpop.f32.mrf.mxu0  ;;  %v677_v34 = vpop.f32.mrf.mxu1  ;;  %v692_v14 = vadd.f32 %v626_v28, %v524_v5  ;;  %v686_v57 = vadd.f32 %v1273_v12, %v518_v56  ;;  %v687_v44 = vadd.f32 %v1275_v17, %v519_v18 }
 0x112   : > { %966 = vpow2.f32 %v870_v30  ;;  %v872_v35 = vmul.f32 -1.442695, %v691_v32  ;;  %v693_v50 = vadd.f32 %v628_v33, %v525_v13  ;;  %v694_v52 = vadd.f32 %v677_v34, %v526_v40 }
 0x113   : > { %968 = vpow2.f32 %v871_v31  ;;  %v679_v36 = vpop.f32.mrf.mxu1  ;;  %v630_v37 = vpop.f32.mrf.mxu0  ;;  %v696_v16 = vadd.f32 %v692_v14, %v684_v63 }
 0x114   : > { %970 = vpow2.f32 %v872_v35  ;;  %v695_v19 = vadd.f32 %v679_v36, %v527_v1  ;;  %v697_v20 = vadd.f32 %v693_v50, %v685_v42  ;;  %v698_v22 = vadd.f32 %v694_v52, %v686_v57 }
 0x115   : > { %v681_v38 = vpop.f32.mrf.mxu1  ;;  %v631_v39 = vpop.f32.mrf.mxu0 }
 0x116   : > { %v699_v60 = vadd.f32 %v695_v19, %v687_v44 }
 0x117   : > { %v682_v43 = vpop.f32.mrf.mxu1 }
 0x11d   : > { %v965_v45 = vpop.eup %964 }
 0x11e   : > { %v712_v46 = vadd.f32 1.0, %v965_v45 }
 0x11f   : > { %v967_v48 = vpop.eup %966 }
 0x120   : > { %v969_v51 = vpop.eup %968  ;;  %972 = vrcp.f32 %v712_v46  ;;  %v713_v53 = vadd.f32 1.0, %v967_v48 }
 0x121   : > { %v714_v55 = vadd.f32 1.0, %v969_v51  ;;  %v971_v59 = vpop.eup %970 }
 0x122   : > { %974 = vrcp.f32 %v713_v53  ;;  %v715_v62 = vadd.f32 1.0, %v971_v59 }
 0x123   : > { %976 = vrcp.f32 %v714_v55 }
 0x124   : > { %978 = vrcp.f32 %v715_v62 }
 0x12d   : > { %v973_v2 = vpop.eup %972 }
 0x12e   : > { %v724_v9 = vmul.f32 %v973_v2, %v696_v16 }
 0x12f   : > { %v975_v21 = vpop.eup %974 }
 0x130   : > { %v977_v58 = vpop.eup %976  ;;  %728 = vst [vmem:[%s177_s15] sm:$0xff] %v724_v9  ;;  %v725_v4 = vmul.f32 %v975_v21, %v697_v20 }
 0x131   : > { %v726_v11 = vmul.f32 %v977_v58, %v698_v22  ;;  %v979_v23 = vpop.eup %978 }
 0x132   : > { %729 = vst [vmem:[%s177_s15 + $0x8] sm:$0xff] %v725_v4  ;;  %v727_v12 = vmul.f32 %v979_v23, %v699_v60 }
 0x133   : > { %730 = vst [vmem:[%s177_s15 + $0x10] sm:$0xff] %v726_v11 }
 0x134   : > { %731 = vst [vmem:[%s177_s15 + $0x18] sm:$0xff] %v727_v12 }
 0x135   : > { %993 = shalt.err (!%p990_p6)
}
 0x136   : > { %s994_s21 = scalar_lea.hbm %s747_s22, 512  ;;  %s998_s28 = scalar_lea.hbm %s1349_s3, 2048 }
 0x137   : > { %p995_p7 = scmp.ne.s32.totalorder %s747_s22, %s994_s21  ;;  %p999_p11 = scmp.lt.s32.totalorder %s747_s22, %s1349_s3 }
 0x138   : > { %p1000_p12 = scmp.lt.s32.totalorder %s998_s28, %s994_s21 }
 0x139   : > { %p996_p9 = pnand %p995_p7, %p1148_p3 }
 0x13a   : > { %p1001_p13 = por %p1000_p12, %p999_p11 }
 0x13b   : > { %p997_p10 = pneg %p996_p9 }
 0x13d   : > { %p1002_p0 = pnand %p1001_p13, %p997_p10 }
 0x13f   : > { %1005 = shalt.err (!%p1002_p0)
}
 0x140   : > { %880 = dma.vmem_to_hbm [thread:$0]  (%p1148_p3), %s750_s9, 512, %s747_s22, %s733_s23  }
 0x141 PF: > { %p886_p1 = scmp.ge.s32.totalorder %s1072_s19, 2  ;;  %s761_s6 = sand.u32 1, %s1044_s12  }
 0x142   : > { %s762_s7 = scalar_lea.sflag [#allocation3], %s761_s6 }
 0x143   : > { %p883_p2 = pnand %p886_p1, %p1157_p8 }
 0x145   : > { %p884_p4 = pneg %p883_p2 }
 0x147   : > { %1039 = dma.done.wait (%p884_p4), %s762_s7, 512  }
 0x148   : > { %1041 = vsyncadd (%p884_p4), %s762_s7, 4294966784  ;;  %s16_s19 = sadd.s32 1, %s1072_s19   ;;  %s1360_s15 = sld [smem:[#allocation5_spill]] }
 0x149   : > { %p13_p5 = scmp.ge.s32.totalorder %s16_s19, 6   ;;  %s1361_s16 = sld [smem:[#allocation6_spill]] }
 0x14a   : > { %s1362_s17 = sld [smem:[#allocation7_spill]]  ;;  %s1364_s12 = smov %s1048_s13 }
 0x14b   : > { %s1363_s18 = sld [smem:[#allocation8_spill]]  ;;  %s1365_s13 = smov %s1052_s14 }
 0x14c   : > { %s1366_s14 = smov %s1166_s30  ;;  %15 = sbr.rel (!%p13_p5) target bundleno = 5 (0x5), region = 72 }
 0x151   :  { %767 = vsyncpa [#allocation3], 1 }
 0x152   :  { %769 = vsyncpa [#allocation3 + $0x1], 1 }

</bundles_post_ra>
